<compile_context>
chip_gen: v7x
topology: tpu7x:2x2x1
jax: 0.10.0
libtpu: 0.0.40
codegen_flags: <defaults>
</compile_context>

<pallas_src>
import functools

import jax
import jax.numpy as jnp
import numpy as np
from jax.experimental import pallas as pl
from jax.experimental.pallas import tpu as pltpu

EPS = 1e-5


def _basic_block_kernel(x_ref, shm_ref, shp_ref, wb1_ref, wb2_ref,
                        fold_ref, spread_ref,
                        g1_ref, b1_ref, g2_ref, b2_ref, out_ref, *, inv_count):
    f32 = jnp.float32
    x = x_ref[...]               # (R, W*C) lane-dense input; also the residual identity
    shm = shm_ref[...]           # (R, R) row shift dy=-1 (zeros rows crossing image bound)
    shp = shp_ref[...]           # (R, R) row shift dy=+1
    fold = fold_ref[...]         # (W*C, C)  sum over the W groups -> per-channel
    spread = spread_ref[...]     # (C, W*C)  broadcast per-channel -> lanes

    def conv3x3(t, wb_ref):
        # kx handled by the block-banded weights; ky = -1/0/+1 via shift matrices.
        # Three (R, W*C) @ (W*C, W*C) MXU matmuls, accumulated in f32.
        acc = jnp.dot(t, wb_ref[1], preferred_element_type=f32)
        acc = acc + jnp.dot(jnp.dot(shm, t, preferred_element_type=f32),
                            wb_ref[0], preferred_element_type=f32)
        acc = acc + jnp.dot(jnp.dot(shp, t, preferred_element_type=f32),
                            wb_ref[2], preferred_element_type=f32)
        return acc

    def bn_train(acc, g_ref, b_ref):
        # Train-mode per-channel batch stats (centered, two-pass variance),
        # applied as one fused scale+bias on the lane-dense tensor.
        lane_sum = jnp.sum(acc, axis=0, keepdims=True)                       # (1, W*C)
        mean_c = jnp.dot(lane_sum, fold, preferred_element_type=f32) * inv_count   # (1, C)
        mean_l = jnp.dot(mean_c, spread, preferred_element_type=f32)         # (1, W*C)
        cent = acc - mean_l
        var_c = jnp.dot(jnp.sum(cent * cent, axis=0, keepdims=True), fold,
                        preferred_element_type=f32) * inv_count              # (1, C)
        scale_c = g_ref[...] * jax.lax.rsqrt(var_c + EPS)                    # (1, C)
        scale_l = jnp.dot(scale_c, spread, preferred_element_type=f32)       # (1, W*C)
        bias_l = jnp.dot(b_ref[...], spread, preferred_element_type=f32)     # (1, W*C)
        return cent * scale_l + bias_l

    out1 = jnp.maximum(bn_train(conv3x3(x, wb1_ref), g1_ref, b1_ref), 0.0)
    out2 = bn_train(conv3x3(out1, wb2_ref), g2_ref, b2_ref)
    out_ref[...] = jnp.maximum(out2 + x, 0.0)


def basic_block(x_nchw, params):
    """x_nchw: (N, C, H, W) float32; params = (w1, g1, b1, w2, g2, b2) with
    conv weights in PyTorch OIHW layout.  Returns the NCHW output."""
    w1, g1, b1, w2, g2, b2 = params
    N, C, H, W = x_nchw.shape
    Cout = w1.shape[0]
    assert Cout == C, "identity residual (stride=1, no downsample) needs inplanes == planes"
    R, L = N * H, W * C

    # lane-dense (N*H, W*C) view of the NHWC activations (contiguous reshape)
    x_ld = jnp.transpose(x_nchw, (0, 2, 3, 1)).reshape(R, L).astype(jnp.float32)

    # 3x3 conv -> three block-banded (W*Cin, W*Cout) matrices, one per ky tap.
    # The kx = -1/0/+1 taps sit on the block (sub/super)diagonals, which also
    # implements the zero padding along W for free.
    def banded(w_oihw):
        w_hwio = jnp.transpose(w_oihw, (2, 3, 1, 0)).astype(jnp.float32)     # (3,3,Ci,Co)
        rows = []
        for ky in range(3):
            m = jnp.zeros((W * C, W * Cout), jnp.float32)
            for kx, dx in enumerate((-1, 0, 1)):
                m = m + jnp.kron(jnp.eye(W, k=-dx, dtype=jnp.float32), w_hwio[ky, kx])
            rows.append(m)
        return jnp.stack(rows)                                               # (3, W*C, W*Co)

    wb1, wb2 = banded(w1), banded(w2)

    # Row-shift matrices for ky = 0 / 2 (dy = -1 / +1); they zero the rows that
    # would cross an image boundary, i.e. the conv's zero padding along H.
    def shift_mat(dy):
        m = np.zeros((R, R), np.float32)
        r = np.arange(R)
        ok = ((r % H) + dy >= 0) & ((r % H) + dy < H)
        m[r[ok], r[ok] + dy] = 1.0
        return jnp.asarray(m)

    sh_m1, sh_p1 = shift_mat(-1), shift_mat(+1)

    # Per-channel fold / spread matrices for BN stats in the lane-dense layout
    # (lane index = w*C + c).
    lane_c = np.arange(L) % C
    fold = jnp.asarray((lane_c[:, None] == np.arange(C)[None, :]).astype(np.float32))    # (L, C)
    spread = jnp.asarray((np.arange(C)[:, None] == lane_c[None, :]).astype(np.float32))  # (C, L)

    g1v = g1.reshape(1, C).astype(jnp.float32)
    b1v = b1.reshape(1, C).astype(jnp.float32)
    g2v = g2.reshape(1, C).astype(jnp.float32)
    b2v = b2.reshape(1, C).astype(jnp.float32)

    args = (x_ld, sh_m1, sh_p1, wb1, wb2, fold, spread, g1v, b1v, g2v, b2v)
    flops = 2 * (2 * 2 * R * R * L + 3 * 2 * R * L * L)    # shift + banded matmuls, both convs
    bytes_accessed = sum(int(np.prod(a.shape)) * 4 for a in args) + R * L * 4

    kernel = functools.partial(_basic_block_kernel, inv_count=1.0 / float(N * H * W))
    out_ld = pl.pallas_call(
        kernel,
        out_shape=jax.ShapeDtypeStruct((R, L), jnp.float32),
        in_specs=[pl.BlockSpec(memory_space=pltpu.MemorySpace.VMEM)] * len(args),
        out_specs=pl.BlockSpec(memory_space=pltpu.MemorySpace.VMEM),
        compiler_params=pltpu.CompilerParams(vmem_limit_bytes=32 * 1024 * 1024),
        cost_estimate=pl.CostEstimate(flops=flops, transcendentals=2 * C,
                                      bytes_accessed=bytes_accessed),
    )(*args)

    # TODO(synk): for realistic ResNet activation sizes, add a grid over N/H row
    # blocks ("parallel" dimension semantics) with two-pass cross-block BN stats
    # instead of this single-block, everything-resident-in-VMEM version.

    return jnp.transpose(out_ld.reshape(N, H, W, C), (0, 3, 1, 2))           # back to NCHW


def reference(x, params):
    """Pure-JAX reference mirroring the PyTorch forward (train-mode BN)."""
    w1, g1, b1, w2, g2, b2 = params

    def conv(x, w):
        return jax.lax.conv_general_dilated(
            x, w, window_strides=(1, 1), padding=((1, 1), (1, 1)),
            dimension_numbers=('NCHW', 'OIHW', 'NCHW'))

    def bn(x, g, b):
        mean = jnp.mean(x, axis=(0, 2, 3), keepdims=True)
        var = jnp.mean((x - mean) ** 2, axis=(0, 2, 3), keepdims=True)
        return ((x - mean) * jax.lax.rsqrt(var + EPS)
                * g.reshape(1, -1, 1, 1) + b.reshape(1, -1, 1, 1))

    out = jax.nn.relu(bn(conv(x, w1), g1, b1))
    out = bn(conv(out, w2), g2, b2)
    return jax.nn.relu(out + x)


if __name__ == "__main__":
    # BasicBlock(inplanes=8, planes=8, stride=1, downsample=None)
    N, C, H, W = 2, 8, 16, 16
    key = jax.random.PRNGKey(0)
    kx, k1, k2, kg1, kb1, kg2, kb2 = jax.random.split(key, 7)

    x = jax.random.normal(kx, (N, C, H, W), jnp.float32)
    w1 = 0.1 * jax.random.normal(k1, (C, C, 3, 3), jnp.float32)   # conv1.weight (OIHW)
    w2 = 0.1 * jax.random.normal(k2, (C, C, 3, 3), jnp.float32)   # conv2.weight (OIHW)
    g1 = 1.0 + 0.1 * jax.random.normal(kg1, (C,), jnp.float32)    # bn1.weight
    b1 = 0.1 * jax.random.normal(kb1, (C,), jnp.float32)          # bn1.bias
    g2 = 1.0 + 0.1 * jax.random.normal(kg2, (C,), jnp.float32)    # bn2.weight
    b2 = 0.1 * jax.random.normal(kb2, (C,), jnp.float32)          # bn2.bias
    params = (w1, g1, b1, w2, g2, b2)

    out = jax.block_until_ready(basic_block(x, params))
    ref = jax.block_until_ready(reference(x, params))

    np.testing.assert_allclose(np.asarray(out), np.asarray(ref), rtol=2e-2, atol=2e-2)
    assert out.shape == (N, C, H, W)
    print("KERNEL_OK")
</pallas_src>

<mosaic_0001>
module attributes {stable_mosaic.version = 11 : i64} {
  func.func @_basic_block_kernel(%arg0: memref<32x128xf32, #tpu.memory_space<vmem>>, %arg1: memref<32x32xf32, #tpu.memory_space<vmem>>, %arg2: memref<32x32xf32, #tpu.memory_space<vmem>>, %arg3: memref<3x128x128xf32, #tpu.memory_space<vmem>>, %arg4: memref<3x128x128xf32, #tpu.memory_space<vmem>>, %arg5: memref<128x8xf32, #tpu.memory_space<vmem>>, %arg6: memref<8x128xf32, #tpu.memory_space<vmem>>, %arg7: memref<1x8xf32, #tpu.memory_space<vmem>>, %arg8: memref<1x8xf32, #tpu.memory_space<vmem>>, %arg9: memref<1x8xf32, #tpu.memory_space<vmem>>, %arg10: memref<1x8xf32, #tpu.memory_space<vmem>>, %arg11: memref<32x128xf32, #tpu.memory_space<vmem>>) attributes {dimension_semantics = [], scalar_prefetch = 0 : i64, scratch_operands = 0 : i64, tpu.core_type = #tpu.core_type<tc>} {
    %c0 = arith.constant 0 : index
    %c0_0 = arith.constant 0 : index
    %0 = vector.load %arg0[%c0, %c0_0] : memref<32x128xf32, #tpu.memory_space<vmem>>, vector<32x128xf32>
    %c0_1 = arith.constant 0 : index
    %c0_2 = arith.constant 0 : index
    %1 = vector.load %arg1[%c0_1, %c0_2] : memref<32x32xf32, #tpu.memory_space<vmem>>, vector<32x32xf32>
    %c0_3 = arith.constant 0 : index
    %c0_4 = arith.constant 0 : index
    %2 = vector.load %arg2[%c0_3, %c0_4] : memref<32x32xf32, #tpu.memory_space<vmem>>, vector<32x32xf32>
    %c0_5 = arith.constant 0 : index
    %c0_6 = arith.constant 0 : index
    %3 = vector.load %arg5[%c0_5, %c0_6] : memref<128x8xf32, #tpu.memory_space<vmem>>, vector<128x8xf32>
    %c0_7 = arith.constant 0 : index
    %c0_8 = arith.constant 0 : index
    %4 = vector.load %arg6[%c0_7, %c0_8] : memref<8x128xf32, #tpu.memory_space<vmem>>, vector<8x128xf32>
    %c1 = arith.constant 1 : index
    %c0_9 = arith.constant 0 : index
    %c0_10 = arith.constant 0 : index
    %5 = vector.load %arg3[%c1, %c0_9, %c0_10] : memref<3x128x128xf32, #tpu.memory_space<vmem>>, vector<1x128x128xf32>
    %6 = vector.shape_cast %5 : vector<1x128x128xf32> to vector<128x128xf32>
    %cst = arith.constant dense<0.000000e+00> : vector<32x128xf32>
    %7 = tpu.matmul %0, %6, %cst {dimension_numbers = #tpu.dot_dimension_numbers<[1], [0], [0], [1], [0, 0, 1, 1], [], []>} : vector<32x128xf32>, vector<128x128xf32>, vector<32x128xf32> -> vector<32x128xf32>
    %cst_11 = arith.constant dense<0.000000e+00> : vector<32x128xf32>
    %8 = tpu.matmul %1, %0, %cst_11 {dimension_numbers = #tpu.dot_dimension_numbers<[1], [0], [0], [1], [0, 0, 1, 1], [], []>} : vector<32x32xf32>, vector<32x128xf32>, vector<32x128xf32> -> vector<32x128xf32>
    %c0_12 = arith.constant 0 : index
    %c0_13 = arith.constant 0 : index
    %c0_14 = arith.constant 0 : index
    %9 = vector.load %arg3[%c0_12, %c0_13, %c0_14] : memref<3x128x128xf32, #tpu.memory_space<vmem>>, vector<1x128x128xf32>
    %10 = vector.shape_cast %9 : vector<1x128x128xf32> to vector<128x128xf32>
    %cst_15 = arith.constant dense<0.000000e+00> : vector<32x128xf32>
    %11 = tpu.matmul %8, %10, %cst_15 {dimension_numbers = #tpu.dot_dimension_numbers<[1], [0], [0], [1], [0, 0, 1, 1], [], []>} : vector<32x128xf32>, vector<128x128xf32>, vector<32x128xf32> -> vector<32x128xf32>
    %12 = arith.addf %7, %11 : vector<32x128xf32>
    %cst_16 = arith.constant dense<0.000000e+00> : vector<32x128xf32>
    %13 = tpu.matmul %2, %0, %cst_16 {dimension_numbers = #tpu.dot_dimension_numbers<[1], [0], [0], [1], [0, 0, 1, 1], [], []>} : vector<32x32xf32>, vector<32x128xf32>, vector<32x128xf32> -> vector<32x128xf32>
    %c2 = arith.constant 2 : index
    %c0_17 = arith.constant 0 : index
    %c0_18 = arith.constant 0 : index
    %14 = vector.load %arg3[%c2, %c0_17, %c0_18] : memref<3x128x128xf32, #tpu.memory_space<vmem>>, vector<1x128x128xf32>
    %15 = vector.shape_cast %14 : vector<1x128x128xf32> to vector<128x128xf32>
    %cst_19 = arith.constant dense<0.000000e+00> : vector<32x128xf32>
    %16 = tpu.matmul %13, %15, %cst_19 {dimension_numbers = #tpu.dot_dimension_numbers<[1], [0], [0], [1], [0, 0, 1, 1], [], []>} : vector<32x128xf32>, vector<128x128xf32>, vector<32x128xf32> -> vector<32x128xf32>
    %17 = arith.addf %12, %16 : vector<32x128xf32>
    %cst_20 = arith.constant dense<0.000000e+00> : vector<128xf32>
    %18 = vector.multi_reduction <add>, %17, %cst_20 [0] : vector<32x128xf32> to vector<128xf32>
    %19 = vector.shape_cast %18 : vector<128xf32> to vector<1x128xf32>
    %cst_21 = arith.constant dense<0.000000e+00> : vector<1x8xf32>
    %20 = tpu.matmul %19, %3, %cst_21 {dimension_numbers = #tpu.dot_dimension_numbers<[1], [0], [0], [1], [0, 0, 1, 1], [], []>} : vector<1x128xf32>, vector<128x8xf32>, vector<1x8xf32> -> vector<1x8xf32>
    %cst_22 = arith.constant 0.001953125 : f32
    %21 = vector.broadcast %cst_22 : f32 to vector<1x8xf32>
    %22 = arith.mulf %20, %21 : vector<1x8xf32>
    %cst_23 = arith.constant dense<0.000000e+00> : vector<1x128xf32>
    %23 = tpu.matmul %22, %4, %cst_23 {dimension_numbers = #tpu.dot_dimension_numbers<[1], [0], [0], [1], [0, 0, 1, 1], [], []>} : vector<1x8xf32>, vector<8x128xf32>, vector<1x128xf32> -> vector<1x128xf32>
    %24 = vector.broadcast %23 : vector<1x128xf32> to vector<32x128xf32>
    %25 = arith.subf %17, %24 : vector<32x128xf32>
    %26 = arith.mulf %25, %25 : vector<32x128xf32>
    %cst_24 = arith.constant dense<0.000000e+00> : vector<128xf32>
    %27 = vector.multi_reduction <add>, %26, %cst_24 [0] : vector<32x128xf32> to vector<128xf32>
    %28 = vector.shape_cast %27 : vector<128xf32> to vector<1x128xf32>
    %cst_25 = arith.constant dense<0.000000e+00> : vector<1x8xf32>
    %29 = tpu.matmul %28, %3, %cst_25 {dimension_numbers = #tpu.dot_dimension_numbers<[1], [0], [0], [1], [0, 0, 1, 1], [], []>} : vector<1x128xf32>, vector<128x8xf32>, vector<1x8xf32> -> vector<1x8xf32>
    %cst_26 = arith.constant 0.001953125 : f32
    %30 = vector.broadcast %cst_26 : f32 to vector<1x8xf32>
    %31 = arith.mulf %29, %30 : vector<1x8xf32>
    %c0_27 = arith.constant 0 : index
    %c0_28 = arith.constant 0 : index
    %32 = vector.load %arg7[%c0_27, %c0_28] : memref<1x8xf32, #tpu.memory_space<vmem>>, vector<1x8xf32>
    %cst_29 = arith.constant 9.99999974E-6 : f32
    %33 = vector.broadcast %cst_29 : f32 to vector<1x8xf32>
    %34 = arith.addf %31, %33 : vector<1x8xf32>
    %35 = math.rsqrt %34 : vector<1x8xf32>
    %36 = arith.mulf %32, %35 : vector<1x8xf32>
    %cst_30 = arith.constant dense<0.000000e+00> : vector<1x128xf32>
    %37 = tpu.matmul %36, %4, %cst_30 {dimension_numbers = #tpu.dot_dimension_numbers<[1], [0], [0], [1], [0, 0, 1, 1], [], []>} : vector<1x8xf32>, vector<8x128xf32>, vector<1x128xf32> -> vector<1x128xf32>
    %c0_31 = arith.constant 0 : index
    %c0_32 = arith.constant 0 : index
    %38 = vector.load %arg8[%c0_31, %c0_32] : memref<1x8xf32, #tpu.memory_space<vmem>>, vector<1x8xf32>
    %cst_33 = arith.constant dense<0.000000e+00> : vector<1x128xf32>
    %39 = tpu.matmul %38, %4, %cst_33 {dimension_numbers = #tpu.dot_dimension_numbers<[1], [0], [0], [1], [0, 0, 1, 1], [], []>} : vector<1x8xf32>, vector<8x128xf32>, vector<1x128xf32> -> vector<1x128xf32>
    %40 = vector.broadcast %37 : vector<1x128xf32> to vector<32x128xf32>
    %41 = arith.mulf %25, %40 : vector<32x128xf32>
    %42 = vector.broadcast %39 : vector<1x128xf32> to vector<32x128xf32>
    %43 = arith.addf %41, %42 : vector<32x128xf32>
    %cst_34 = arith.constant 0.000000e+00 : f32
    %44 = vector.broadcast %cst_34 : f32 to vector<32x128xf32>
    %45 = arith.maximumf %43, %44 : vector<32x128xf32>
    %c1_35 = arith.constant 1 : index
    %c0_36 = arith.constant 0 : index
    %c0_37 = arith.constant 0 : index
    %46 = vector.load %arg4[%c1_35, %c0_36, %c0_37] : memref<3x128x128xf32, #tpu.memory_space<vmem>>, vector<1x128x128xf32>
    %47 = vector.shape_cast %46 : vector<1x128x128xf32> to vector<128x128xf32>
    %cst_38 = arith.constant dense<0.000000e+00> : vector<32x128xf32>
    %48 = tpu.matmul %45, %47, %cst_38 {dimension_numbers = #tpu.dot_dimension_numbers<[1], [0], [0], [1], [0, 0, 1, 1], [], []>} : vector<32x128xf32>, vector<128x128xf32>, vector<32x128xf32> -> vector<32x128xf32>
    %cst_39 = arith.constant dense<0.000000e+00> : vector<32x128xf32>
    %49 = tpu.matmul %1, %45, %cst_39 {dimension_numbers = #tpu.dot_dimension_numbers<[1], [0], [0], [1], [0, 0, 1, 1], [], []>} : vector<32x32xf32>, vector<32x128xf32>, vector<32x128xf32> -> vector<32x128xf32>
    %c0_40 = arith.constant 0 : index
    %c0_41 = arith.constant 0 : index
    %c0_42 = arith.constant 0 : index
    %50 = vector.load %arg4[%c0_40, %c0_41, %c0_42] : memref<3x128x128xf32, #tpu.memory_space<vmem>>, vector<1x128x128xf32>
    %51 = vector.shape_cast %50 : vector<1x128x128xf32> to vector<128x128xf32>
    %cst_43 = arith.constant dense<0.000000e+00> : vector<32x128xf32>
    %52 = tpu.matmul %49, %51, %cst_43 {dimension_numbers = #tpu.dot_dimension_numbers<[1], [0], [0], [1], [0, 0, 1, 1], [], []>} : vector<32x128xf32>, vector<128x128xf32>, vector<32x128xf32> -> vector<32x128xf32>
    %53 = arith.addf %48, %52 : vector<32x128xf32>
    %cst_44 = arith.constant dense<0.000000e+00> : vector<32x128xf32>
    %54 = tpu.matmul %2, %45, %cst_44 {dimension_numbers = #tpu.dot_dimension_numbers<[1], [0], [0], [1], [0, 0, 1, 1], [], []>} : vector<32x32xf32>, vector<32x128xf32>, vector<32x128xf32> -> vector<32x128xf32>
    %c2_45 = arith.constant 2 : index
    %c0_46 = arith.constant 0 : index
    %c0_47 = arith.constant 0 : index
    %55 = vector.load %arg4[%c2_45, %c0_46, %c0_47] : memref<3x128x128xf32, #tpu.memory_space<vmem>>, vector<1x128x128xf32>
    %56 = vector.shape_cast %55 : vector<1x128x128xf32> to vector<128x128xf32>
    %cst_48 = arith.constant dense<0.000000e+00> : vector<32x128xf32>
    %57 = tpu.matmul %54, %56, %cst_48 {dimension_numbers = #tpu.dot_dimension_numbers<[1], [0], [0], [1], [0, 0, 1, 1], [], []>} : vector<32x128xf32>, vector<128x128xf32>, vector<32x128xf32> -> vector<32x128xf32>
    %58 = arith.addf %53, %57 : vector<32x128xf32>
    %cst_49 = arith.constant dense<0.000000e+00> : vector<128xf32>
    %59 = vector.multi_reduction <add>, %58, %cst_49 [0] : vector<32x128xf32> to vector<128xf32>
    %60 = vector.shape_cast %59 : vector<128xf32> to vector<1x128xf32>
    %cst_50 = arith.constant dense<0.000000e+00> : vector<1x8xf32>
    %61 = tpu.matmul %60, %3, %cst_50 {dimension_numbers = #tpu.dot_dimension_numbers<[1], [0], [0], [1], [0, 0, 1, 1], [], []>} : vector<1x128xf32>, vector<128x8xf32>, vector<1x8xf32> -> vector<1x8xf32>
    %cst_51 = arith.constant 0.001953125 : f32
    %62 = vector.broadcast %cst_51 : f32 to vector<1x8xf32>
    %63 = arith.mulf %61, %62 : vector<1x8xf32>
    %cst_52 = arith.constant dense<0.000000e+00> : vector<1x128xf32>
    %64 = tpu.matmul %63, %4, %cst_52 {dimension_numbers = #tpu.dot_dimension_numbers<[1], [0], [0], [1], [0, 0, 1, 1], [], []>} : vector<1x8xf32>, vector<8x128xf32>, vector<1x128xf32> -> vector<1x128xf32>
    %65 = vector.broadcast %64 : vector<1x128xf32> to vector<32x128xf32>
    %66 = arith.subf %58, %65 : vector<32x128xf32>
    %67 = arith.mulf %66, %66 : vector<32x128xf32>
    %cst_53 = arith.constant dense<0.000000e+00> : vector<128xf32>
    %68 = vector.multi_reduction <add>, %67, %cst_53 [0] : vector<32x128xf32> to vector<128xf32>
    %69 = vector.shape_cast %68 : vector<128xf32> to vector<1x128xf32>
    %cst_54 = arith.constant dense<0.000000e+00> : vector<1x8xf32>
    %70 = tpu.matmul %69, %3, %cst_54 {dimension_numbers = #tpu.dot_dimension_numbers<[1], [0], [0], [1], [0, 0, 1, 1], [], []>} : vector<1x128xf32>, vector<128x8xf32>, vector<1x8xf32> -> vector<1x8xf32>
    %cst_55 = arith.constant 0.001953125 : f32
    %71 = vector.broadcast %cst_55 : f32 to vector<1x8xf32>
    %72 = arith.mulf %70, %71 : vector<1x8xf32>
    %c0_56 = arith.constant 0 : index
    %c0_57 = arith.constant 0 : index
    %73 = vector.load %arg9[%c0_56, %c0_57] : memref<1x8xf32, #tpu.memory_space<vmem>>, vector<1x8xf32>
    %cst_58 = arith.constant 9.99999974E-6 : f32
    %74 = vector.broadcast %cst_58 : f32 to vector<1x8xf32>
    %75 = arith.addf %72, %74 : vector<1x8xf32>
    %76 = math.rsqrt %75 : vector<1x8xf32>
    %77 = arith.mulf %73, %76 : vector<1x8xf32>
    %cst_59 = arith.constant dense<0.000000e+00> : vector<1x128xf32>
    %78 = tpu.matmul %77, %4, %cst_59 {dimension_numbers = #tpu.dot_dimension_numbers<[1], [0], [0], [1], [0, 0, 1, 1], [], []>} : vector<1x8xf32>, vector<8x128xf32>, vector<1x128xf32> -> vector<1x128xf32>
    %c0_60 = arith.constant 0 : index
    %c0_61 = arith.constant 0 : index
    %79 = vector.load %arg10[%c0_60, %c0_61] : memref<1x8xf32, #tpu.memory_space<vmem>>, vector<1x8xf32>
    %cst_62 = arith.constant dense<0.000000e+00> : vector<1x128xf32>
    %80 = tpu.matmul %79, %4, %cst_62 {dimension_numbers = #tpu.dot_dimension_numbers<[1], [0], [0], [1], [0, 0, 1, 1], [], []>} : vector<1x8xf32>, vector<8x128xf32>, vector<1x128xf32> -> vector<1x128xf32>
    %81 = vector.broadcast %78 : vector<1x128xf32> to vector<32x128xf32>
    %82 = arith.mulf %66, %81 : vector<32x128xf32>
    %83 = vector.broadcast %80 : vector<1x128xf32> to vector<32x128xf32>
    %84 = arith.addf %82, %83 : vector<32x128xf32>
    %85 = arith.addf %84, %0 : vector<32x128xf32>
    %cst_63 = arith.constant 0.000000e+00 : f32
    %86 = vector.broadcast %cst_63 : f32 to vector<32x128xf32>
    %87 = arith.maximumf %85, %86 : vector<32x128xf32>
    %c0_64 = arith.constant 0 : index
    %c0_65 = arith.constant 0 : index
    %88 = vector.load %arg11[%c0_64, %c0_65] : memref<32x128xf32, #tpu.memory_space<vmem>>, vector<32x128xf32>
    tpu.vector_store %arg11[%c0_64, %c0_65], %87 {strides = array<i32>} : memref<32x128xf32, #tpu.memory_space<vmem>>, vector<32x128xf32>,
    return
  }
}

</mosaic_0001>

<bundles_post_ra>
// kernel: tpu_custom_call.1
= control target key start
LH: loop header
LB: loop body
LE: loop exit
PB: predicated region body
PF: predicated region fallthrough
CT: control target
= control target key end

     0   :  { %16 = vsyncpa [#allocation3], 0  ;;  %s3548_s0 = inlined_call_operand.vmem [shape: f32[32,128], index: 0, kind: input, shape index: {}]   ;;  %s3549_s1 = inlined_call_operand.vmem [shape: f32[32,32], index: 1, kind: input, shape index: {}]   ;;  %s3550_s2 = inlined_call_operand.vmem [shape: f32[32,32], index: 2, kind: input, shape index: {}]   ;;  %s3551_s3 = inlined_call_operand.hbm [shape: f32[3,128,128], index: 3, kind: input, shape index: {}]   ;;  %s3552_s4 = inlined_call_operand.hbm [shape: f32[3,128,128], index: 4, kind: input, shape index: {}]   ;;  %s3553_s5 = inlined_call_operand.vmem [shape: f32[128,8], index: 5, kind: input, shape index: {}]   ;;  %s3554_s6 = inlined_call_operand.vmem [shape: f32[8,128], index: 6, kind: input, shape index: {}]   ;;  %s3555_s7 = inlined_call_operand.vmem [shape: f32[1,8], index: 7, kind: input, shape index: {}]   ;;  %s3556_s8 = inlined_call_operand.vmem [shape: f32[1,8], index: 8, kind: input, shape index: {}]   ;;  %s3557_s9 = inlined_call_operand.vmem [shape: f32[1,8], index: 9, kind: input, shape index: {}]   ;;  %s3558_s10 = inlined_call_operand.vmem [shape: f32[1,8], index: 10, kind: input, shape index: {}]   ;;  %s3559_s11 = inlined_call_operand.hbm [shape: f32[32,128], index: 11, kind: output, shape index: {}]  }
   0x1   :  { %17 = vsyncpa [#allocation6], 0 }
   0x2   :  { %18 = vsyncpa [#allocation4], 0  ;;  %s3070_s17 = smov [#allocation2]   ;;  %s2998_s21 = scalar_lea.hbm %s3551_s3, 6144 }
   0x3   :  { %s30_s18 = sshll.u32 %s3070_s17, 4  ;;  %p2999_p0 = scmp.ne.s32.totalorder %s3551_s3, %s2998_s21  ;;  %s31_s18 = int_to_ptr.vmem [resolvable:$true] %s30_s18 }
   0x4   :  { %p3002_p1 = scmp.lt.u32.totalorder %s2998_s21, %s3551_s3 }
   0x6   :  { %p3004_p2 = pnand %p3002_p1, %p2999_p0 }
   0x8   :  { %3007 = shalt.err (!%p3004_p2)
}
   0x9   :  { %s3008_s26 = scalar_lea.vmem %s31_s18, 6144  ;;  %p3013_p4 = scmp.lt.s32.totalorder %s31_s18, %s31_s18 }
   0xa   :  { %p3009_p3 = scmp.ne.s32.totalorder %s31_s18, %s3008_s26  ;;  %p3014_p5 = scmp.lt.s32.totalorder %s3008_s26, %s3008_s26 }
   0xc   :  { %p3015_p6 = por %p3014_p5, %p3013_p4 }
   0xe   :  { %p3016_p7 = pnand %p3015_p6, %p3009_p3 }
  0x10   :  { %3019 = shalt.err (!%p3016_p7)
}
  0x11   :  { %s3071_s27 = smov 128   ;;  %s3072_s28 = smov 8  }
  0x12   :  { %36 = dma.hbm_to_vmem [thread:$0]  %s3551_s3, 6144, %s31_s18, [#allocation3], %s3071_s27, %s3071_s27, %s3072_s28  }
  0x13   :  { %s3073_s12 = smov [#allocation5]   ;;  %s3020_s16 = scalar_lea.hbm %s3552_s4, 6144 }
  0x14   :  { %s42_s13 = sshll.u32 %s3073_s12, 4  ;;  %p3021_p8 = scmp.ne.s32.totalorder %s3552_s4, %s3020_s16  ;;  %s43_s13 = int_to_ptr.vmem [resolvable:$true] %s42_s13 }
  0x15   :  { %p3024_p9 = scmp.lt.u32.totalorder %s3020_s16, %s3552_s4 }
  0x17   :  { %p3026_p10 = pnand %p3024_p9, %p3021_p8 }
  0x19   :  { %3029 = shalt.err (!%p3026_p10)
}
  0x1a   :  { %s3030_s22 = scalar_lea.vmem %s43_s13, 6144  ;;  %p3035_p12 = scmp.lt.s32.totalorder %s43_s13, %s43_s13 }
  0x1b   :  { %p3031_p11 = scmp.ne.s32.totalorder %s43_s13, %s3030_s22  ;;  %p3036_p13 = scmp.lt.s32.totalorder %s3030_s22, %s3030_s22 }
  0x1d   :  { %p3037_p0 = por %p3036_p13, %p3035_p12 }
  0x1f   :  { %p3038_p1 = pnand %p3037_p0, %p3031_p11 }
  0x21   :  { %3041 = shalt.err (!%p3038_p1)
}
  0x22   :  { %48 = dma.hbm_to_vmem [thread:$0]  %s3552_s4, 6144, %s43_s13, [#allocation6], %s3071_s27, %s3071_s27, %s3072_s28  }
  0x23   :  { %3064 = dma.done.wait [#allocation3], 6144  }
  0x24   :  { %3065 = vsyncadd [#allocation3], 4294961152 }
  0x25   :  { %3066 = dma.done.wait [#allocation6], 6144  }
  0x26   :  { %3067 = vsyncadd [#allocation6], 4294961152  ;;  %vm113_vm0 = vcmask 261120   ;;  %v3171_v0 = vld [vmem:[%s3548_s0] sm:$0xff]  ;;  %v3176_v1 = vld [vmem:[%s3548_s0 + $0x8] sm:$0xff]  ;;  %v3074_v44 = vmov 0.0|0.0  }
  0x27   :  { %v3181_v2 = vld [vmem:[%s3548_s0 + $0x10] sm:$0xff]  ;;  %v2646_v3 = vpack.c.bf16 %v3176_v1, %v3171_v0  ;;  %v3188_v4 = vld [vmem:[%s3548_s0 + $0x18] sm:$0xff]  ;;  %v3193_v5 = vld [vmem:[%s3549_s1] sm:$0xff]  ;;  %vm3075_vm1 = vmmov 0   ;;  %vm680_vm2 = vcmask 64512  }
  0x28   :  { %v2650_v6 = vpack.c.bf16 %v3188_v4, %v3181_v2  ;;  %2200 = vmatprep.mubr.msk.f32.mxu0 %vm113_vm0, %v3193_v5  ;;  %v211_v7 = vld [vmem:[#allocation2] sm:$0xff]  ;;  %v212_v8 = vld [vmem:[#allocation2 + $0x8] sm:$0xff]  ;;  %v213_v9 = vld [vmem:[#allocation2 + $0x10] sm:$0xff] }
  0x29   :  { %2647 = vmatprep.subr.bf16.mxu0 %v2646_v3  ;;  %v2654_v10 = vpack.c.bf16 %v212_v8, %v211_v7  ;;  %v214_v11 = vld [vmem:[#allocation2 + $0x18] sm:$0xff]  ;;  %v215_v13 = vld [vmem:[#allocation2 + $0x20] sm:$0xff]  ;;  %v216_v14 = vld [vmem:[#allocation2 + $0x28] sm:$0xff] }
  0x2a   :  { %2649 = vmatpush3.bf16.msra.mxu0 %v2646_v3  ;;  %v2658_v12 = vpack.c.bf16 %v214_v11, %v213_v9  ;;  %v3202_v15 = vld [vmem:[%s3549_s1 + $0x8] sm:$0xff]  ;;  %v3207_v16 = vld [vmem:[%s3549_s1 + $0x10] sm:$0xff]  ;;  %v2662_v17 = vpack.c.bf16 %v216_v14, %v215_v13  ;;  %v218_v19 = vld [vmem:[#allocation2 + $0x38] sm:$0xff] }
  0x2b   :  { %2651 = vmatprep.subr.bf16.mxu0 %v2650_v6  ;;  %2655 = vmatprep.subr.bf16.mxu1 %v2654_v10  ;;  %v217_v18 = vld [vmem:[#allocation2 + $0x30] sm:$0xff]  ;;  %v3216_v20 = vld [vmem:[%s3549_s1 + $0x18] sm:$0xff]  ;;  %v3221_v21 = vld [vmem:[%s3550_s2] sm:$0xff] }
  0x2c   :  { %2657 = vmatpush3.bf16.msra.mxu1 %v2654_v10  ;;  %v2666_v22 = vpack.c.bf16 %v218_v19, %v217_v18  ;;  %v219_v23 = vld [vmem:[#allocation2 + $0x40] sm:$0xff]  ;;  %v220_v24 = vld [vmem:[#allocation2 + $0x48] sm:$0xff]  ;;  %v3235_v26 = vld [vmem:[%s3550_s2 + $0x10] sm:$0xff] }
  0x2d   :  { %2659 = vmatprep.subr.bf16.mxu1 %v2658_v12  ;;  %v3230_v25 = vld [vmem:[%s3550_s2 + $0x8] sm:$0xff]  ;;  %v2670_v27 = vpack.c.bf16 %v220_v24, %v219_v23  ;;  %v221_v28 = vld [vmem:[#allocation2 + $0x50] sm:$0xff]  ;;  %v222_v29 = vld [vmem:[#allocation2 + $0x58] sm:$0xff] }
  0x2e   :  { %2653 = vmatpush3.bf16.msra.mxu0 %v2650_v6  ;;  %v3244_v30 = vld [vmem:[%s3550_s2 + $0x18] sm:$0xff]  ;;  %v2674_v31 = vpack.c.bf16 %v222_v29, %v221_v28  ;;  %v223_v32 = vld [vmem:[#allocation2 + $0x60] sm:$0xff]  ;;  %v224_v33 = vld [vmem:[#allocation2 + $0x68] sm:$0xff] }
  0x2f   :  { %2719 = vmatprep.subr.bf16.mxu0 %v2646_v3  ;;  %v2678_v34 = vpack.c.bf16 %v224_v33, %v223_v32  ;;  %v225_v35 = vld [vmem:[#allocation2 + $0x70] sm:$0xff]  ;;  %v226_v36 = vld [vmem:[#allocation2 + $0x78] sm:$0xff]  ;;  %v97_v38 = vld [vmem:[#allocation2 + $0x80] sm:$0xff] }
  0x30   :  { %2661 = vmatpush3.bf16.msra.mxu1 %v2658_v12  ;;  %v2682_v37 = vpack.c.bf16 %v226_v36, %v225_v35  ;;  %v98_v39 = vld [vmem:[#allocation2 + $0x88] sm:$0xff]  ;;  %v79_v41 = vld [vmem:[%s3553_s5] sm:$0xff]  ;;  %v81_v43 = vld [vmem:[%s3553_s5 + $0x10] sm:$0xff] }
  0x31   :  { %2201 = vmatmul.mubr.msk.f32.vlgmr.msra.gmra.mrb[0].mxu0 %vm113_vm0, %v3202_v15  ;;  %2663 = vmatprep.subr.bf16.mxu1 %v2662_v17  ;;  %v2686_v40 = vpack.c.bf16 %v98_v39, %v97_v38  ;;  %v80_v42 = vld [vmem:[%s3553_s5 + $0x8] sm:$0xff]  ;;  %v82_v46 = vld [vmem:[%s3553_s5 + $0x18] sm:$0xff]  ;;  %v83_v48 = vld [vmem:[%s3553_s5 + $0x20] sm:$0xff] }
  0x32   :  { %2203 = vmatprep.mubr.msk.f32.mxu0 %vm113_vm0, %v3207_v16  ;;  %2721 = vmatpush3.bf16.msra.mxu0 %v2646_v3  ;;  %v3258_v45 = vpack.c.bf16 %v80_v42, %v79_v41  ;;  %v3264_v47 = vpack.c.bf16 %v82_v46, %v81_v43  ;;  %v84_v49 = vld [vmem:[%s3553_s5 + $0x28] sm:$0xff]  ;;  %v99_v51 = vld [vmem:[#allocation2 + $0x90] sm:$0xff]  ;;  %v100_v52 = vld [vmem:[#allocation2 + $0x98] sm:$0xff] }
  0x33   :  { %2723 = vmatprep.subr.bf16.mxu0 %v2650_v6  ;;  %v3274_v50 = vpack.c.bf16 %v84_v49, %v83_v48  ;;  %v2690_v55 = vpack.c.bf16 %v100_v52, %v99_v51  ;;  %v101_v56 = vld [vmem:[#allocation2 + $0xa0] sm:$0xff]  ;;  %v102_v57 = vld [vmem:[#allocation2 + $0xa8] sm:$0xff]  ;;  %v103_v61 = vld [vmem:[#allocation2 + $0xb0] sm:$0xff] }
  0x34   :  { %2665 = vmatpush3.bf16.msra.mxu1 %v2662_v17  ;;  %v2694_v59 = vpack.c.bf16 %v102_v57, %v101_v56  ;;  %v104_v62 = vld [vmem:[#allocation2 + $0xb8] sm:$0xff]  ;;  %v105_v7 = vld [vmem:[#allocation2 + $0xc0] sm:$0xff]  ;;  %v106_v8 = vld [vmem:[#allocation2 + $0xc8] sm:$0xff] }
  0x35   :  { %2204 = vmatmul.mubr.msk.f32.gmra.mrb[2].mxu0 %vm113_vm0, %v3216_v20  ;;  %2667 = vmatprep.subr.bf16.mxu1 %v2666_v22  ;;  %v2698_v3 = vpack.c.bf16 %v104_v62, %v103_v61  ;;  %v2702_v10 = vpack.c.bf16 %v106_v8, %v105_v7  ;;  %v107_v12 = vld [vmem:[#allocation2 + $0xd0] sm:$0xff]  ;;  %v108_v13 = vld [vmem:[#allocation2 + $0xd8] sm:$0xff]  ;;  %v110_v17 = vld [vmem:[#allocation2 + $0xe8] sm:$0xff]  ;;  %v3076_v8 = vmov 0.0  }
  0x36   :  { %2725 = vmatpush3.bf16.msra.mxu0 %v2650_v6  ;;  %2290 = vmatprep.mubr.msk.f32.mxu0 %vm113_vm0, %v3221_v21  ;;  %v2706_v14 = vpack.c.bf16 %v108_v13, %v107_v12  ;;  %v111_v19 = vld [vmem:[#allocation2 + $0xf0] sm:$0xff]  ;;  %v495_v24 = vld [vmem:[#allocation2 + $0x100] sm:$0xff]  ;;  %v508_v46 = vld [vmem:[#allocation2 + $0x168] sm:$0xff] }
  0x37   :  { %2758 = vmatprep.subr.bf16.mxu0 %v3074_v44  ;;  %v497_v29 = vld [vmem:[#allocation2 + $0x110] sm:$0xff]  ;;  %v499_v33 = vld [vmem:[#allocation2 + $0x120] sm:$0xff]  ;;  %v510_v49 = vld [vmem:[#allocation2 + $0x178] sm:$0xff] }
  0x38   :  { %2669 = vmatpush3.bf16.msra.mxu1 %v2666_v22  ;;  %v112_v22 = vld [vmem:[#allocation2 + $0xf8] sm:$0xff]  ;;  %v501_v36 = vld [vmem:[#allocation2 + $0x130] sm:$0xff]  ;;  %v503_v39 = vld [vmem:[#allocation2 + $0x140] sm:$0xff] }
  0x39   :  { %2291 = vmatmul.mubr.msk.f32.vlgmr.msra.gmra.mrb[4].mxu0 %vm113_vm0, %v3230_v25  ;;  %2671 = vmatprep.subr.bf16.mxu1 %v2670_v27  ;;  %v2714_v23 = vpack.c.bf16 %v112_v22, %v111_v19  ;;  %v505_v42 = vld [vmem:[#allocation2 + $0x150] sm:$0xff]  ;;  %v507_v43 = vld [vmem:[#allocation2 + $0x160] sm:$0xff]  ;;  %v88_v56 = vld [vmem:[%s3553_s5 + $0x48] sm:$0xff] }
  0x3a   :  { %2293 = vmatprep.mubr.msk.f32.mxu0 %vm113_vm0, %v3235_v26  ;;  %2760 = vmatpush3.bf16.msra.mxu0 %v3258_v45  ;;  %v2750_v48 = vpack.c.bf16 %v508_v46, %v507_v43  ;;  %v85_v52 = vld [vmem:[%s3553_s5 + $0x30] sm:$0xff]  ;;  %v91_v61 = vld [vmem:[%s3553_s5 + $0x60] sm:$0xff]  ;;  %v92_v62 = vld [vmem:[%s3553_s5 + $0x68] sm:$0xff] }
  0x3b   :  { %2761 = vmatprep.subr.bf16.mxu0 %v3074_v44 }
  0x3c   :  { %2673 = vmatpush3.bf16.msra.mxu1 %v2670_v27  ;;  %v496_v27 = vld [vmem:[#allocation2 + $0x108] sm:$0xff] }
  0x3d   :  { %2294 = vmatmul.mubr.msk.f32.gmra.mrb[6].mxu0 %vm113_vm0, %v3244_v30  ;;  %2675 = vmatprep.subr.bf16.mxu1 %v2674_v31  ;;  %v2726_v28 = vpack.c.bf16 %v496_v27, %v495_v24  ;;  %v3347_v27 = vld [vmem:[%s3554_s6] sm:$0xff] }
  0x3e   :  { %2763 = vmatpush3.bf16.msra.mxu0 %v3264_v47  ;;  %2366 = vmatprep.mubr.msk.f32.mxu0 %vm3075_vm1, %v3076_v8 }
  0x3f   :  { %2764 = vmatprep.subr.bf16.mxu0 %v3074_v44 }
  0x40   :  { %2677 = vmatpush3.bf16.msra.mxu1 %v2674_v31  ;;  %v498_v31 = vld [vmem:[#allocation2 + $0x118] sm:$0xff] }
  0x41   :  { %2679 = vmatprep.subr.bf16.mxu1 %v2678_v34  ;;  %v2730_v32 = vpack.c.bf16 %v498_v31, %v497_v29 }
  0x42   :  { %2766 = vmatpush3.bf16.msra.mxu0 %v3274_v50 }
  0x43   :  { %2767 = vmatprep.subr.bf16.mxu0 %v3074_v44 }
  0x44   :  { %2681 = vmatpush3.bf16.msra.mxu1 %v2678_v34  ;;  %v500_v34 = vld [vmem:[#allocation2 + $0x128] sm:$0xff] }
  0x45   :  { %2683 = vmatprep.subr.bf16.mxu1 %v2682_v37  ;;  %v2734_v35 = vpack.c.bf16 %v500_v34, %v499_v33 }
  0x48   :  { %2685 = vmatpush3.bf16.msra.mxu1 %v2682_v37  ;;  %v502_v37 = vld [vmem:[#allocation2 + $0x138] sm:$0xff] }
  0x49   :  { %2687 = vmatprep.subr.bf16.mxu1 %v2686_v40  ;;  %v2738_v38 = vpack.c.bf16 %v502_v37, %v501_v36 }
 0x104   :  { %v2202_v53 = vpop.f32.mrb[0].mxu0 }
 0x105   :  { %v192_v54 = vpop.f32.mrb[1].mxu0 }
 0x106   :  { %2238 = vmatprep.mubr.f32.mxu1 %v192_v54 }
 0x107   :  { %2239 = vmatmul.mubr.f32.vlgmr.msra.gmra.mrb[0].mxu1 %v2202_v53  ;;  %v86_v53 = vld [vmem:[%s3553_s5 + $0x38] sm:$0xff] }
 0x108   :  { %2689 = vmatpush3.bf16.msra.mxu1 %v2686_v40  ;;  %v2205_v58 = vpop.f32.mrb[2].mxu0  ;;  %v504_v40 = vld [vmem:[#allocation2 + $0x148] sm:$0xff]  ;;  %v3298_v54 = vpack.c.bf16 %v86_v53, %v85_v52 }
 0x109   :  { %2691 = vmatprep.subr.bf16.mxu1 %v2690_v55  ;;  %v202_v60 = vpop.f32.mrb[3].mxu0  ;;  %v2742_v41 = vpack.c.bf16 %v504_v40, %v503_v39 }
 0x10a   :  { %2241 = vmatprep.mubr.f32.mxu1 %v202_v60  ;;  %2769 = vmatpush3.bf16.msra.mxu0 %v3298_v54 }
 0x10b   :  { %2242 = vmatmul.mubr.f32.gmra.mrb[2].mxu1 %v2205_v58  ;;  %2770 = vmatprep.subr.bf16.mxu0 %v3074_v44  ;;  %v89_v58 = vld [vmem:[%s3553_s5 + $0x50] sm:$0xff] }
 0x10c   :  { %2693 = vmatpush3.bf16.msra.mxu1 %v2690_v55  ;;  %2276 = vmatprep.mubr.f32.mxu1 %v3171_v0  ;;  %v3280_v63 = vpop.f32.mrb[4].mxu0  ;;  %v109_v0 = vld [vmem:[#allocation2 + $0xe0] sm:$0xff] }
 0x10d   :  { %2695 = vmatprep.subr.bf16.mxu1 %v2694_v59  ;;  %v475_v6 = vpop.f32.mrb[5].mxu0  ;;  %v2710_v18 = vpack.c.bf16 %v110_v17, %v109_v0  ;;  %v87_v55 = vld [vmem:[%s3553_s5 + $0x40] sm:$0xff] }
 0x10e   :  { %v3308_v57 = vpack.c.bf16 %v88_v56, %v87_v55 }
 0x110   :  { %2697 = vmatpush3.bf16.msra.mxu1 %v2694_v59  ;;  %v3282_v9 = vpop.f32.mrb[6].mxu0  ;;  %2772 = vmatpush3.bf16.msra.mxu0 %v3308_v57  ;;  %v90_v59 = vld [vmem:[%s3553_s5 + $0x58] sm:$0xff] }
 0x111   :  { %2699 = vmatprep.subr.bf16.mxu1 %v2698_v3  ;;  %v3284_v11 = vpop.f32.mrb[7].mxu0  ;;  %2773 = vmatprep.subr.bf16.mxu0 %v3074_v44  ;;  %v3318_v60 = vpack.c.bf16 %v90_v59, %v89_v58 }
 0x114   :  { %2701 = vmatpush3.bf16.msra.mxu1 %v2698_v3  ;;  %2775 = vmatpush3.bf16.msra.mxu0 %v3318_v60  ;;  %v93_v3 = vld [vmem:[%s3553_s5 + $0x70] sm:$0xff] }
 0x115   :  { %2703 = vmatprep.subr.bf16.mxu1 %v2702_v10  ;;  %2776 = vmatprep.subr.bf16.mxu0 %v3074_v44 }
 0x118   :  { %2705 = vmatpush3.bf16.msra.mxu1 %v2702_v10 }
 0x119   :  { %2707 = vmatprep.subr.bf16.mxu1 %v2706_v14 }
 0x11c   :  { %2709 = vmatpush3.bf16.msra.mxu1 %v2706_v14 }
 0x11d   :  { %2711 = vmatprep.subr.bf16.mxu1 %v2710_v18 }
 0x120   :  { %2713 = vmatpush3.bf16.msra.mxu1 %v2710_v18 }
 0x121   :  { %2715 = vmatprep.subr.bf16.mxu1 %v2714_v23 }
 0x124   :  { %2717 = vmatpush3.bf16.msra.mxu1 %v2714_v23 }
 0x125   :  { %2727 = vmatprep.subr.bf16.mxu1 %v2726_v28 }
 0x127   :  { %2277 = vmatmul.mubr.f32.vlgmr.msra.gmra.mrb[0].mxu1 %v3176_v1  ;;  %v506_v1 = vld [vmem:[#allocation2 + $0x158] sm:$0xff] }
 0x128   :  { %2729 = vmatpush3.bf16.msra.mxu1 %v2726_v28  ;;  %2279 = vmatprep.mubr.f32.mxu1 %v3181_v2  ;;  %v2746_v2 = vpack.c.bf16 %v506_v1, %v505_v42 }
 0x129   :  { %2731 = vmatprep.subr.bf16.mxu1 %v2730_v32 }
 0x12b   :  { %2280 = vmatmul.mubr.f32.gmra.mrb[2].mxu1 %v3188_v4  ;;  %v509_v4 = vld [vmem:[#allocation2 + $0x170] sm:$0xff] }
 0x12c   :  { %2733 = vmatpush3.bf16.msra.mxu1 %v2730_v32  ;;  %2328 = vmatprep.mubr.f32.mxu1 %v475_v6  ;;  %v2754_v51 = vpack.c.bf16 %v510_v49, %v509_v4  ;;  %v94_v6 = vld [vmem:[%s3553_s5 + $0x78] sm:$0xff]  ;;  %v754_v32 = vlaneseq }
 0x12d   :  { %2735 = vmatprep.subr.bf16.mxu1 %v2734_v35  ;;  %v3338_v7 = vpack.c.bf16 %v94_v6, %v93_v3  ;;  %v846_v3 = vld [vmem:[%s3555_s7] sm:$0x1] }
 0x12e   :  { %v755_v33 = vshrl.u32 %v754_v32, 7  ;;  %v1129_v32 = vld [vmem:[#allocation5 + $0x50] sm:$0xff] }
 0x130   :  { %2737 = vmatpush3.bf16.msra.mxu1 %v2734_v35  ;;  %v3372_v34 = vsub.s32 0, %v755_v33  ;;  %v1130_v33 = vld [vmem:[#allocation5 + $0x58] sm:$0xff] }
 0x131   :  { %2739 = vmatprep.subr.bf16.mxu1 %v2738_v38 }
 0x134   :  { %2741 = vmatpush3.bf16.msra.mxu1 %v2738_v38 }
 0x135   :  { %2743 = vmatprep.subr.bf16.mxu1 %v2742_v41 }
 0x138   :  { %2745 = vmatpush3.bf16.msra.mxu1 %v2742_v41 }
 0x139   :  { %2747 = vmatprep.subr.bf16.mxu1 %v2746_v2 }
 0x13c   :  { %2749 = vmatpush3.bf16.msra.mxu1 %v2746_v2 }
 0x13d   :  { %2751 = vmatprep.subr.bf16.mxu1 %v2750_v48 }
 0x140   :  { %2753 = vmatpush3.bf16.msra.mxu1 %v2750_v48 }
 0x141   :  { %2755 = vmatprep.subr.bf16.mxu1 %v2754_v51 }
 0x144   :  { %2757 = vmatpush3.bf16.msra.mxu1 %v2754_v51 }
 0x147   :  { %2329 = vmatmul.mubr.f32.vlgmr.msra.gmra.mrb[0].mxu1 %v3280_v63  ;;  %v3328_v63 = vpack.c.bf16 %v92_v62, %v91_v61 }
 0x148   :  { %2331 = vmatprep.mubr.f32.mxu1 %v3284_v11 }
 0x149   :  { %2778 = vmatpush3.bf16.msra.mxu0 %v3328_v63 }
 0x14a   :  { %2779 = vmatprep.subr.bf16.mxu0 %v3074_v44 }
 0x14b   :  { %2332 = vmatmul.mubr.f32.gmra.mrb[2].mxu1 %v3282_v9 }
 0x14d   :  { %2781 = vmatpush3.bf16.msra.mxu0 %v3338_v7 }
 0x14e   :  { %2369 = vmatprep.subr.mxu0 %v3076_v8 }
 0x21a   :  { %v2330_v9 = vpop.f32.mrb[0].mxu1 }
 0x21b   :  { %v577_v10 = vpop.f32.mrb[1].mxu1 }
 0x21c   :  { %v600_v11 = vadd.f32 %v2330_v9, %v577_v10 }
 0x21e   :  { %v2333_v12 = vpop.f32.mrb[2].mxu1 }
 0x21f   :  { %v587_v13 = vpop.f32.mrb[3].mxu1 }
 0x220   :  { %v601_v14 = vadd.f32 %v600_v11, %v587_v13  ;;  %v1119_v11 = vld [vmem:[#allocation5] sm:$0xff] }
 0x222   :  { %v602_v0 = vadd.f32 %v2333_v12, %v601_v14 }
 0x224   :  { %v603_v17 = vrot.slane %v602_v0, 4 }
 0x226   :  { %v604_v18 = vadd.f32 %v603_v17, %v602_v0  ;;  %v1122_v0 = vld [vmem:[#allocation5 + $0x18] sm:$0xff] }
 0x228   :  { %v605_v19 = vrot.slane %v604_v18, 2 }
 0x22a   :  { %v606_v22 = vadd.f32 %v605_v19, %v604_v18  ;;  %v1123_v18 = vld [vmem:[#allocation5 + $0x20] sm:$0xff]  ;;  %v1124_v19 = vld [vmem:[#allocation5 + $0x28] sm:$0xff] }
 0x22c   :  { %v607_v23 = vrot.slane %v606_v22, 1 }
 0x22e   :  { %v608_v24 = vadd.f32 %v607_v23, %v606_v22  ;;  %v2822_v22 = vpack.c.bf16 %v1124_v19, %v1123_v18  ;;  %v1125_v23 = vld [vmem:[#allocation5 + $0x30] sm:$0xff]  ;;  %v1025_v18 = vld [vmem:[#allocation5 + $0xb8] sm:$0xff] }
 0x230   :  { %2367 = vmatmul.mubr.f32.vlgmr.msra.gmra.mrb[8].mxu0 %v608_v24  ;;  %v1126_v24 = vld [vmem:[#allocation5 + $0x38] sm:$0xff] }
 0x231   :  { %2370 = vmatpush3.msra.mxu0 %v3347_v27  ;;  %2371 = vmatprep.mubr.msk.f32.mxu0 %vm3075_vm1, %v3076_v8 }
 0x232   :  { %2782 = vmatprep.subr.bf16.mxu0 %v3074_v44 }
 0x303   :  { %v675_v28 = vpop.f32.mrb[8].mxu0 }
 0x304   :  { %v679_v29 = vmul.f32 0.001953125, %v675_v28  ;;  %v2368_v31 = vpop.f32.mrb[9].mxu0  ;;  %v2826_v28 = vpack.c.bf16 %v1126_v24, %v1125_v23  ;;  %v1026_v24 = vld [vmem:[#allocation5 + $0xc0] sm:$0xff] }
 0x305   :  { %v1128_v31 = vld [vmem:[#allocation5 + $0x48] sm:$0xff] }
 0x306   :  { %2372 = vmatmul.mubr.msk.f32.vlgmr.msra.gmra.mrb[10].mxu0 %vm680_vm2, %v679_v29  ;;  %v1127_v29 = vld [vmem:[#allocation5 + $0x40] sm:$0xff] }
 0x307   :  { %2784 = vmatpush3.bf16.msra.mxu0 %v3258_v45  ;;  %2406 = vmatprep.mubr.msk.f32.mxu0 %vm3075_vm1, %v3076_v8 }
 0x308   :  { %2785 = vmatprep.subr.bf16.mxu0 %v3074_v44 }
 0x30b   :  { %2787 = vmatpush3.bf16.msra.mxu0 %v3264_v47 }
 0x30c   :  { %2788 = vmatprep.subr.bf16.mxu0 %v3074_v44 }
 0x30f   :  { %2790 = vmatpush3.bf16.msra.mxu0 %v3274_v50 }
 0x310   :  { %2791 = vmatprep.subr.bf16.mxu0 %v3074_v44 }
 0x313   :  { %2793 = vmatpush3.bf16.msra.mxu0 %v3298_v54 }
 0x314   :  { %2794 = vmatprep.subr.bf16.mxu0 %v3074_v44 }
 0x317   :  { %2796 = vmatpush3.bf16.msra.mxu0 %v3308_v57 }
 0x318   :  { %2797 = vmatprep.subr.bf16.mxu0 %v3074_v44 }
 0x31b   :  { %2799 = vmatpush3.bf16.msra.mxu0 %v3318_v60 }
 0x31c   :  { %2800 = vmatprep.subr.bf16.mxu0 %v3074_v44 }
 0x31f   :  { %2802 = vmatpush3.bf16.msra.mxu0 %v3328_v63 }
 0x320   :  { %2803 = vmatprep.subr.bf16.mxu0 %v3074_v44 }
 0x323   :  { %2805 = vmatpush3.bf16.msra.mxu0 %v3338_v7 }
 0x324   :  { %2409 = vmatprep.subr.mxu0 %v3076_v8 }
 0x3d9   :  { %v750_v35 = vpop.f32.mrb[10].mxu0 }
 0x3da   :  { %v757_v36 = vrot.slane %v750_v35, %v3372_v34  ;;  %v2373_v37 = vpop.f32.mrb[11].mxu0  ;;  %v2834_v35 = vpack.c.bf16 %v1130_v33, %v1129_v32  ;;  %v1028_v32 = vld [vmem:[#allocation5 + $0xd0] sm:$0xff]  ;;  %v1029_v33 = vld [vmem:[#allocation5 + $0xd8] sm:$0xff] }
 0x3db   :  { %v1132_v37 = vld [vmem:[#allocation5 + $0x68] sm:$0xff] }
 0x3dc   :  { %v3375_v38 = vsub.f32 %v577_v10, %v757_v36  ;;  %v3377_v39 = vsub.f32 %v2330_v9, %v757_v36  ;;  %v3379_v40 = vsub.f32 %v587_v13, %v757_v36  ;;  %v3381_v41 = vsub.f32 %v2333_v12, %v757_v36  ;;  %v923_v10 = vld [vmem:[%s3556_s8] sm:$0x1]  ;;  %v1120_v12 = vld [vmem:[#allocation5 + $0x8] sm:$0xff]  ;;  %v1121_v13 = vld [vmem:[#allocation5 + $0x10] sm:$0xff] }
 0x3dd   :  { %v2814_v14 = vpack.c.bf16 %v1120_v12, %v1119_v11  ;;  %v2818_v17 = vpack.c.bf16 %v1122_v0, %v1121_v13  ;;  %v1131_v36 = vld [vmem:[#allocation5 + $0x60] sm:$0xff]  ;;  %v1023_v12 = vld [vmem:[#allocation5 + $0xa8] sm:$0xff] }
 0x3de   :  { %v762_v42 = vmul.f32 %v3375_v38, %v3375_v38  ;;  %v763_v1 = vmul.f32 %v3377_v39, %v3377_v39  ;;  %v764_v2 = vmul.f32 %v3379_v40, %v3379_v40  ;;  %v765_v46 = vmul.f32 %v3381_v41, %v3381_v41  ;;  %v1022_v11 = vld [vmem:[#allocation5 + $0xa0] sm:$0xff] }
 0x3df   :  { %2815 = vmatprep.subr.bf16.mxu1 %v2814_v14  ;;  %v2854_v0 = vpack.c.bf16 %v1023_v12, %v1022_v11 }
 0x3e0   :  { %v766_v43 = vadd.f32 %v763_v1, %v762_v42  ;;  %2817 = vmatpush3.bf16.msra.mxu1 %v2814_v14  ;;  %v2838_v42 = vpack.c.bf16 %v1132_v37, %v1131_v36  ;;  %v1133_v1 = vld [vmem:[#allocation5 + $0x70] sm:$0xff]  ;;  %v1030_v36 = vld [vmem:[#allocation5 + $0xe0] sm:$0xff]  ;;  %v1031_v37 = vld [vmem:[#allocation5 + $0xe8] sm:$0xff] }
 0x3e1   :  { %2819 = vmatprep.subr.bf16.mxu1 %v2818_v17 }
 0x3e2   :  { %v767_v48 = vadd.f32 %v766_v43, %v764_v2  ;;  %v1134_v2 = vld [vmem:[#allocation5 + $0x78] sm:$0xff] }
 0x3e3   :  { %v2842_v43 = vpack.c.bf16 %v1134_v2, %v1133_v1  ;;  %v1032_v1 = vld [vmem:[#allocation5 + $0xf0] sm:$0xff]  ;;  %v1033_v2 = vld [vmem:[#allocation5 + $0xf8] sm:$0xff] }
 0x3e4   :  { %v768_v4 = vadd.f32 %v767_v48, %v765_v46  ;;  %2821 = vmatpush3.bf16.msra.mxu1 %v2818_v17  ;;  %v1024_v17 = vld [vmem:[#allocation5 + $0xb0] sm:$0xff] }
 0x3e5   :  { %2823 = vmatprep.subr.bf16.mxu1 %v2822_v22 }
 0x3e6   :  { %v769_v49 = vrot.slane %v768_v4, 4 }
 0x3e8   :  { %v770_v51 = vadd.f32 %v769_v49, %v768_v4  ;;  %2825 = vmatpush3.bf16.msra.mxu1 %v2822_v22  ;;  %v2858_v22 = vpack.c.bf16 %v1025_v18, %v1024_v17 }
 0x3e9   :  { %2827 = vmatprep.subr.bf16.mxu1 %v2826_v28 }
 0x3ea   :  { %v771_v52 = vrot.slane %v770_v51, 2 }
 0x3ec   :  { %v772_v53 = vadd.f32 %v771_v52, %v770_v51  ;;  %2829 = vmatpush3.bf16.msra.mxu1 %v2826_v28  ;;  %v1027_v28 = vld [vmem:[#allocation5 + $0xc8] sm:$0xff] }
 0x3ee   :  { %v773_v55 = vrot.slane %v772_v53, 1 }
 0x3f0   :  { %v774_v56 = vadd.f32 %v773_v55, %v772_v53 }
 0x3f2   :  { %2407 = vmatmul.mubr.f32.vlgmr.msra.gmra.mrb[12].mxu0 %v774_v56 }
 0x3f3   :  { %2410 = vmatpush3.msra.mxu0 %v3347_v27  ;;  %2411 = vmatprep.mubr.msk.f32.mxu0 %vm3075_vm1, %v3076_v8 }
 0x3f4   :  { %2414 = vmatprep.subr.mxu0 %v3076_v8 }
 0x4c5   :  { %v841_v58 = vpop.f32.mrb[12].mxu0 }
 0x4c6   :  { %v845_v59 = vmul.f32 0.001953125, %v841_v58  ;;  %v2408_v61 = vpop.f32.mrb[13].mxu0 }
 0x4c8   :  { %v847_v62 = vadd.f32 1e-05, %v845_v59 }
 0x4ca   :  { %2990 = vrsqrt.f32 %v847_v62 }
 0x4d4   :  { %v2991_v6 = vpop.eup %2990 }
 0x4d5   :  { %v849_v9 = vmul.f32 %v2991_v6, %v846_v3 }
 0x4d7   :  { %2412 = vmatmul.mubr.msk.f32.vlgmr.msra.gmra.mrb[14].mxu0 %vm680_vm2, %v849_v9 }
 0x4d8   :  { %2415 = vmatpush3.msra.mxu0 %v3347_v27  ;;  %2416 = vmatprep.mubr.msk.f32.mxu0 %vm3075_vm1, %v3076_v8 }
 0x4db   :  { %2417 = vmatmul.mubr.msk.f32.vlgmr.msra.gmra.mrb[16].mxu0 %vm680_vm2, %v923_v10 }
 0x4dc   :  { %2427 = vmatprep.mubr.msk.f32.mxu0 %vm113_vm0, %v3193_v5  ;;  %v2830_v5 = vpack.c.bf16 %v1128_v31, %v1127_v29  ;;  %v2862_v31 = vpack.c.bf16 %v1027_v28, %v1026_v24 }
 0x4de   :  { %2831 = vmatprep.subr.bf16.mxu1 %v2830_v5 }
 0x4df   :  { %2833 = vmatpush3.bf16.msra.mxu1 %v2830_v5 }
 0x4e0   :  { %2835 = vmatprep.subr.bf16.mxu1 %v2834_v35 }
 0x4e3   :  { %2837 = vmatpush3.bf16.msra.mxu1 %v2834_v35  ;;  %v2866_v35 = vpack.c.bf16 %v1029_v33, %v1028_v32 }
 0x4e4   :  { %2839 = vmatprep.subr.bf16.mxu1 %v2838_v42 }
 0x4e7   :  { %2841 = vmatpush3.bf16.msra.mxu1 %v2838_v42  ;;  %v2870_v42 = vpack.c.bf16 %v1031_v37, %v1030_v36 }
 0x4e8   :  { %2843 = vmatprep.subr.bf16.mxu1 %v2842_v43 }
 0x4eb   :  { %2845 = vmatpush3.bf16.msra.mxu1 %v2842_v43  ;;  %v2874_v43 = vpack.c.bf16 %v1033_v2, %v1032_v1 }
 0x5aa   :  { %v919_v46 = vpop.f32.mrb[14].mxu0 }
 0x5ab   :  { %v1000_v48 = vrot.slane %v919_v46, %v3372_v34  ;;  %v2413_v4 = vpop.f32.mrb[15].mxu0  ;;  %v1391_v46 = vld [vmem:[#allocation5 + $0x100] sm:$0xff] }
 0x5ad   :  { %v1001_v49 = vmul.f32 %v1000_v48, %v3375_v38  ;;  %v1002_v52 = vmul.f32 %v1000_v48, %v3377_v39  ;;  %v1003_v53 = vmul.f32 %v1000_v48, %v3379_v40  ;;  %v1004_v55 = vmul.f32 %v1000_v48, %v3381_v41  ;;  %v1392_v48 = vld [vmem:[#allocation5 + $0x108] sm:$0xff] }
 0x5ae   :  { %v993_v51 = vpop.f32.mrb[16].mxu0  ;;  %v2886_v4 = vpack.c.bf16 %v1392_v48, %v1391_v46 }
 0x5af   :  { %v1008_v56 = vrot.slane %v993_v51, %v3372_v34  ;;  %v2418_v58 = vpop.f32.mrb[17].mxu0  ;;  %v1394_v51 = vld [vmem:[#allocation5 + $0x118] sm:$0xff] }
 0x5b0   :  { %v1397_v58 = vld [vmem:[#allocation5 + $0x130] sm:$0xff] }
 0x5b1   :  { %v3414_v59 = vadd.f32 %v1008_v56, %v1001_v49  ;;  %v3416_v61 = vadd.f32 %v1008_v56, %v1002_v52  ;;  %v3418_v62 = vadd.f32 %v1008_v56, %v1003_v53  ;;  %v3420_v3 = vadd.f32 %v1008_v56, %v1004_v55  ;;  %v1393_v49 = vld [vmem:[#allocation5 + $0x110] sm:$0xff]  ;;  %v1395_v53 = vld [vmem:[#allocation5 + $0x120] sm:$0xff]  ;;  %v1396_v55 = vld [vmem:[#allocation5 + $0x128] sm:$0xff] }
 0x5b2   :  { %v2890_v52 = vpack.c.bf16 %v1394_v51, %v1393_v49  ;;  %v2894_v56 = vpack.c.bf16 %v1396_v55, %v1395_v53  ;;  %v1741_v49 = vld [vmem:[%s3557_s9] sm:$0x1]  ;;  %s3077_s9 = smov [#allocation7]  }
 0x5b3   :  { %v1013_v38 = vmax.f32 %v3414_v59, 0.0  ;;  %v1014_v6 = vmax.f32 %v3416_v61, 0.0  ;;  %v1015_v39 = vmax.f32 %v3418_v62, 0.0  ;;  %v1016_v40 = vmax.f32 %v3420_v3, 0.0  ;;  %v1398_v59 = vld [vmem:[#allocation5 + $0x138] sm:$0xff] }
 0x5b4   :  { %v1402_v62 = vld [vmem:[#allocation5 + $0x158] sm:$0xff]  ;;  %v1818_v53 = vld [vmem:[%s3558_s10] sm:$0x1]  ;;  %s1925_s10 = sshll.u32 %s3077_s9, 4  ;;  %s1926_s10 = int_to_ptr.vmem [resolvable:$true] %s1925_s10 }
 0x5b5   :  { %v2806_v41 = vpack.c.bf16 %v1014_v6, %v1013_v38  ;;  %v2810_v9 = vpack.c.bf16 %v1016_v40, %v1015_v39  ;;  %s3042_s12 = scalar_lea.vmem %s1926_s10, 512  ;;  %p3047_p3 = scmp.lt.s32.totalorder %s1926_s10, %s1926_s10 }
 0x5b6   :  { %p3043_p2 = scmp.ne.s32.totalorder %s1926_s10, %s3042_s12  ;;  %p3048_p4 = scmp.lt.s32.totalorder %s3042_s12, %s3042_s12 }
 0x5b7   :  { %2807 = vmatprep.subr.bf16.mxu0 %v2806_v41 }
 0x5b8   :  { %2809 = vmatpush3.bf16.msra.mxu0 %v2806_v41  ;;  %p3049_p5 = por %p3048_p4, %p3047_p3 }
 0x5b9   :  { %2811 = vmatprep.subr.bf16.mxu0 %v2810_v9 }
 0x5ba   :  { %p3050_p6 = pnand %p3049_p5, %p3043_p2 }
 0x5bc   :  { %2813 = vmatpush3.bf16.msra.mxu0 %v2810_v9 }
 0x5bd   :  { %2879 = vmatprep.subr.bf16.mxu0 %v2806_v41 }
 0x5bf   :  { %2428 = vmatmul.mubr.msk.f32.vlgmr.msra.gmra.mrb[18].mxu0 %vm113_vm0, %v3202_v15  ;;  %v1018_v15 = vld [vmem:[#allocation5 + $0x80] sm:$0xff] }
 0x5c0   :  { %2881 = vmatpush3.bf16.msra.mxu0 %v2806_v41  ;;  %2430 = vmatprep.mubr.msk.f32.mxu0 %vm113_vm0, %v3207_v16  ;;  %v1019_v16 = vld [vmem:[#allocation5 + $0x88] sm:$0xff]  ;;  %v1399_v41 = vld [vmem:[#allocation5 + $0x140] sm:$0xff] }
 0x5c1   :  { %2883 = vmatprep.subr.bf16.mxu0 %v2810_v9 }
 0x5c3   :  { %2431 = vmatmul.mubr.msk.f32.gmra.mrb[20].mxu0 %vm113_vm0, %v3216_v20  ;;  %v2846_v20 = vpack.c.bf16 %v1019_v16, %v1018_v15  ;;  %v1403_v15 = vld [vmem:[#allocation5 + $0x160] sm:$0xff]  ;;  %v1404_v16 = vld [vmem:[#allocation5 + $0x168] sm:$0xff] }
 0x5c4   :  { %2885 = vmatpush3.bf16.msra.mxu0 %v2810_v9  ;;  %2517 = vmatprep.mubr.msk.f32.mxu0 %vm113_vm0, %v3221_v21  ;;  %v1020_v21 = vld [vmem:[#allocation5 + $0x90] sm:$0xff]  ;;  %v1400_v9 = vld [vmem:[#allocation5 + $0x148] sm:$0xff]  ;;  %v2910_v3 = vpack.c.bf16 %v1404_v16, %v1403_v15  ;;  %v2994_v16 = vld [vmem:[%s3548_s0] sm:$0xff] }
 0x5c5   :  { %2918 = vmatprep.subr.bf16.mxu0 %v3074_v44  ;;  %2847 = vmatprep.subr.bf16.mxu1 %v2846_v20  ;;  %v2902_v61 = vpack.c.bf16 %v1400_v9, %v1399_v41 }
 0x5c7   :  { %2518 = vmatmul.mubr.msk.f32.vlgmr.msra.gmra.mrb[22].mxu0 %vm113_vm0, %v3230_v25  ;;  %v1021_v25 = vld [vmem:[#allocation5 + $0x98] sm:$0xff] }
 0x5c8   :  { %2520 = vmatprep.mubr.msk.f32.mxu0 %vm113_vm0, %v3235_v26  ;;  %2920 = vmatpush3.bf16.msra.mxu0 %v3258_v45  ;;  %v2850_v10 = vpack.c.bf16 %v1021_v25, %v1020_v21 }
 0x5c9   :  { %2921 = vmatprep.subr.bf16.mxu0 %v3074_v44 }
 0x5cb   :  { %2521 = vmatmul.mubr.msk.f32.gmra.mrb[24].mxu0 %vm113_vm0, %v3244_v30 }
 0x5cc   :  { %2923 = vmatpush3.bf16.msra.mxu0 %v3264_v47  ;;  %2593 = vmatprep.mubr.msk.f32.mxu0 %vm3075_vm1, %v3076_v8 }
 0x5cd   :  { %2924 = vmatprep.subr.bf16.mxu0 %v3074_v44 }
 0x5d0   :  { %2926 = vmatpush3.bf16.msra.mxu0 %v3274_v50 }
 0x5d1   :  { %2927 = vmatprep.subr.bf16.mxu0 %v3074_v44 }
 0x5d4   :  { %2929 = vmatpush3.bf16.msra.mxu0 %v3298_v54 }
 0x5d5   :  { %2930 = vmatprep.subr.bf16.mxu0 %v3074_v44 }
 0x5d8   :  { %2932 = vmatpush3.bf16.msra.mxu0 %v3308_v57 }
 0x5d9   :  { %2933 = vmatprep.subr.bf16.mxu0 %v3074_v44 }
 0x5dc   :  { %2935 = vmatpush3.bf16.msra.mxu0 %v3318_v60 }
 0x5dd   :  { %2936 = vmatprep.subr.bf16.mxu0 %v3074_v44 }
 0x5e0   :  { %2938 = vmatpush3.bf16.msra.mxu0 %v3328_v63 }
 0x5e1   :  { %2939 = vmatprep.subr.bf16.mxu0 %v3074_v44 }
 0x5e4   :  { %2941 = vmatpush3.bf16.msra.mxu0 %v3338_v7 }
 0x5e5   :  { %2596 = vmatprep.subr.mxu0 %v3076_v8 }
 0x692   :  { %v2429_v26 = vpop.f32.mrb[18].mxu0 }
 0x693   :  { %v1100_v30 = vpop.f32.mrb[19].mxu0 }
 0x694   :  { %2465 = vmatprep.mubr.f32.mxu1 %v1100_v30 }
 0x695   :  { %2466 = vmatmul.mubr.f32.vlgmr.msra.gmra.mrb[4].mxu1 %v2429_v26 }
 0x696   :  { %2849 = vmatpush3.bf16.msra.mxu1 %v2846_v20  ;;  %v2432_v13 = vpop.f32.mrb[20].mxu0  ;;  %v1406_v20 = vld [vmem:[#allocation5 + $0x178] sm:$0xff] }
 0x697   :  { %v1110_v14 = vpop.f32.mrb[21].mxu0  ;;  %2851 = vmatprep.subr.bf16.mxu1 %v2850_v10 }
 0x698   :  { %2468 = vmatprep.mubr.f32.mxu1 %v1110_v14 }
 0x699   :  { %2469 = vmatmul.mubr.f32.gmra.mrb[6].mxu1 %v2432_v13 }
 0x69a   :  { %2853 = vmatpush3.bf16.msra.mxu1 %v2850_v10  ;;  %2503 = vmatprep.mubr.f32.mxu1 %v1013_v38  ;;  %v3465_v19 = vpop.f32.mrb[22].mxu0  ;;  %v2898_v38 = vpack.c.bf16 %v1398_v59, %v1397_v58 }
 0x69b   :  { %2855 = vmatprep.subr.bf16.mxu1 %v2854_v0  ;;  %v1371_v23 = vpop.f32.mrb[23].mxu0 }
 0x69e   :  { %2857 = vmatpush3.bf16.msra.mxu1 %v2854_v0  ;;  %v3467_v29 = vpop.f32.mrb[24].mxu0 }
 0x69f   :  { %2859 = vmatprep.subr.bf16.mxu1 %v2858_v22  ;;  %v3469_v5 = vpop.f32.mrb[25].mxu0 }
 0x6a2   :  { %2861 = vmatpush3.bf16.msra.mxu1 %v2858_v22 }
 0x6a3   :  { %2863 = vmatprep.subr.bf16.mxu1 %v2862_v31 }
 0x6a6   :  { %2865 = vmatpush3.bf16.msra.mxu1 %v2862_v31 }
 0x6a7   :  { %2867 = vmatprep.subr.bf16.mxu1 %v2866_v35 }
 0x6aa   :  { %2869 = vmatpush3.bf16.msra.mxu1 %v2866_v35 }
 0x6ab   :  { %2871 = vmatprep.subr.bf16.mxu1 %v2870_v42 }
 0x6ae   :  { %2873 = vmatpush3.bf16.msra.mxu1 %v2870_v42 }
 0x6af   :  { %2875 = vmatprep.subr.bf16.mxu1 %v2874_v43 }
 0x6b2   :  { %2877 = vmatpush3.bf16.msra.mxu1 %v2874_v43 }
 0x6b3   :  { %2887 = vmatprep.subr.bf16.mxu1 %v2886_v4 }
 0x6b5   :  { %2504 = vmatmul.mubr.f32.vlgmr.msra.gmra.mrb[4].mxu1 %v1014_v6  ;;  %v1401_v6 = vld [vmem:[#allocation5 + $0x150] sm:$0xff] }
 0x6b6   :  { %2506 = vmatprep.mubr.f32.mxu1 %v1015_v39  ;;  %2889 = vmatpush3.bf16.msra.mxu1 %v2886_v4  ;;  %v2906_v39 = vpack.c.bf16 %v1402_v62, %v1401_v6 }
 0x6b7   :  { %2891 = vmatprep.subr.bf16.mxu1 %v2890_v52 }
 0x6b9   :  { %2507 = vmatmul.mubr.f32.gmra.mrb[6].mxu1 %v1016_v40  ;;  %v1405_v40 = vld [vmem:[#allocation5 + $0x170] sm:$0xff] }
 0x6ba   :  { %2893 = vmatpush3.bf16.msra.mxu1 %v2890_v52  ;;  %2555 = vmatprep.mubr.f32.mxu1 %v1371_v23  ;;  %v2914_v21 = vpack.c.bf16 %v1406_v20, %v1405_v40  ;;  %v2995_v40 = vld [vmem:[%s3548_s0 + $0x8] sm:$0xff] }
 0x6bb   :  { %2895 = vmatprep.subr.bf16.mxu1 %v2894_v56 }
 0x6be   :  { %2897 = vmatpush3.bf16.msra.mxu1 %v2894_v56 }
 0x6bf   :  { %2899 = vmatprep.subr.bf16.mxu1 %v2898_v38 }
 0x6c2   :  { %2901 = vmatpush3.bf16.msra.mxu1 %v2898_v38 }
 0x6c3   :  { %2903 = vmatprep.subr.bf16.mxu1 %v2902_v61 }
 0x6c6   :  { %2905 = vmatpush3.bf16.msra.mxu1 %v2902_v61 }
 0x6c7   :  { %2907 = vmatprep.subr.bf16.mxu1 %v2906_v39 }
 0x6ca   :  { %2909 = vmatpush3.bf16.msra.mxu1 %v2906_v39 }
 0x6cb   :  { %2911 = vmatprep.subr.bf16.mxu1 %v2910_v3 }
 0x6ce   :  { %2913 = vmatpush3.bf16.msra.mxu1 %v2910_v3 }
 0x6cf   :  { %2915 = vmatprep.subr.bf16.mxu1 %v2914_v21 }
 0x6d2   :  { %2917 = vmatpush3.bf16.msra.mxu1 %v2914_v21 }
 0x6d5   :  { %2556 = vmatmul.mubr.f32.vlgmr.msra.gmra.mrb[4].mxu1 %v3465_v19 }
 0x6d6   :  { %2558 = vmatprep.mubr.f32.mxu1 %v3469_v5 }
 0x6d9   :  { %2559 = vmatmul.mubr.f32.gmra.mrb[6].mxu1 %v3467_v29 }
 0x7a8   :  { %v2557_v25 = vpop.f32.mrb[4].mxu1 }
 0x7a9   :  { %v1473_v26 = vpop.f32.mrb[5].mxu1 }
 0x7aa   :  { %v1496_v30 = vadd.f32 %v2557_v25, %v1473_v26 }
 0x7ac   :  { %v2560_v10 = vpop.f32.mrb[6].mxu1 }
 0x7ad   :  { %v1483_v11 = vpop.f32.mrb[7].mxu1 }
 0x7ae   :  { %v1497_v12 = vadd.f32 %v1496_v30, %v1483_v11 }
 0x7b0   :  { %v1498_v13 = vadd.f32 %v2560_v10, %v1497_v12 }
 0x7b2   :  { %v1499_v14 = vrot.slane %v1498_v13, 4 }
 0x7b4   :  { %v1500_v0 = vadd.f32 %v1499_v14, %v1498_v13 }
 0x7b6   :  { %v1501_v17 = vrot.slane %v1500_v0, 2 }
 0x7b8   :  { %v1502_v18 = vadd.f32 %v1501_v17, %v1500_v0 }
 0x7ba   :  { %v1503_v22 = vrot.slane %v1502_v18, 1 }
 0x7bc   :  { %v1504_v23 = vadd.f32 %v1503_v22, %v1502_v18 }
 0x7be   :  { %2594 = vmatmul.mubr.f32.vlgmr.msra.gmra.mrb[26].mxu0 %v1504_v23 }
 0x7bf   :  { %2597 = vmatpush3.msra.mxu0 %v3347_v27  ;;  %2598 = vmatprep.mubr.msk.f32.mxu0 %vm3075_vm1, %v3076_v8 }
 0x7c0   :  { %2942 = vmatprep.subr.bf16.mxu0 %v3074_v44 }
 0x891   :  { %v1571_v19 = vpop.f32.mrb[26].mxu0 }
 0x892   :  { %v1575_v24 = vmul.f32 0.001953125, %v1571_v19  ;;  %v2595_v28 = vpop.f32.mrb[27].mxu0 }
 0x894   :  { %2599 = vmatmul.mubr.msk.f32.vlgmr.msra.gmra.mrb[28].mxu0 %vm680_vm2, %v1575_v24 }
 0x895   :  { %2944 = vmatpush3.bf16.msra.mxu0 %v3258_v45  ;;  %2633 = vmatprep.mubr.msk.f32.mxu0 %vm3075_vm1, %v3076_v8 }
 0x896   :  { %2945 = vmatprep.subr.bf16.mxu0 %v3074_v44 }
 0x899   :  { %2947 = vmatpush3.bf16.msra.mxu0 %v3264_v47 }
 0x89a   :  { %2948 = vmatprep.subr.bf16.mxu0 %v3074_v44 }
 0x89d   :  { %2950 = vmatpush3.bf16.msra.mxu0 %v3274_v50 }
 0x89e   :  { %2951 = vmatprep.subr.bf16.mxu0 %v3074_v44 }
 0x8a1   :  { %2953 = vmatpush3.bf16.msra.mxu0 %v3298_v54 }
 0x8a2   :  { %2954 = vmatprep.subr.bf16.mxu0 %v3074_v44 }
 0x8a5   :  { %2956 = vmatpush3.bf16.msra.mxu0 %v3308_v57 }
 0x8a6   :  { %2957 = vmatprep.subr.bf16.mxu0 %v3074_v44 }
 0x8a9   :  { %2959 = vmatpush3.bf16.msra.mxu0 %v3318_v60 }
 0x8aa   :  { %2960 = vmatprep.subr.bf16.mxu0 %v3074_v44 }
 0x8ad   :  { %2962 = vmatpush3.bf16.msra.mxu0 %v3328_v63 }
 0x8ae   :  { %2963 = vmatprep.subr.bf16.mxu0 %v3074_v44 }
 0x8b1   :  { %2965 = vmatpush3.bf16.msra.mxu0 %v3338_v7 }
 0x8b2   :  { %2636 = vmatprep.subr.mxu0 %v3076_v8 }
 0x967   :  { %v1645_v45 = vpop.f32.mrb[28].mxu0 }
 0x968   :  { %v1652_v47 = vrot.slane %v1645_v45, %v3372_v34  ;;  %v2600_v50 = vpop.f32.mrb[29].mxu0 }
 0x96a   :  { %v1653_v54 = vsub.f32 %v1473_v26, %v1652_v47  ;;  %v1654_v57 = vsub.f32 %v2557_v25, %v1652_v47  ;;  %v1655_v29 = vsub.f32 %v1483_v11, %v1652_v47  ;;  %v1656_v31 = vsub.f32 %v2560_v10, %v1652_v47  ;;  %v2997_v25 = vld [vmem:[%s3548_s0 + $0x18] sm:$0xff] }
 0x96c   :  { %v1657_v5 = vmul.f32 %v1653_v54, %v1653_v54  ;;  %v1658_v60 = vmul.f32 %v1654_v57, %v1654_v57  ;;  %v1659_v32 = vmul.f32 %v1655_v29, %v1655_v29  ;;  %v1660_v35 = vmul.f32 %v1656_v31, %v1656_v31 }
 0x96e   :  { %v1661_v33 = vadd.f32 %v1658_v60, %v1657_v5 }
 0x970   :  { %v1662_v63 = vadd.f32 %v1661_v33, %v1659_v32 }
 0x972   :  { %v1663_v36 = vadd.f32 %v1662_v63, %v1660_v35 }
 0x974   :  { %v1664_v44 = vrot.slane %v1663_v36, 4 }
 0x976   :  { %v1665_v37 = vadd.f32 %v1664_v44, %v1663_v36 }
 0x978   :  { %v1666_v7 = vrot.slane %v1665_v37, 2 }
 0x97a   :  { %v1667_v42 = vadd.f32 %v1666_v7, %v1665_v37 }
 0x97c   :  { %v1668_v1 = vrot.slane %v1667_v42, 1 }
 0x97e   :  { %v1669_v2 = vadd.f32 %v1668_v1, %v1667_v42 }
 0x980   :  { %2634 = vmatmul.mubr.f32.vlgmr.msra.gmra.mrb[30].mxu0 %v1669_v2 }
 0x981   :  { %2637 = vmatpush3.msra.mxu0 %v3347_v27  ;;  %2638 = vmatprep.mubr.msk.f32.mxu0 %vm3075_vm1, %v3076_v8 }
 0x982   :  { %2641 = vmatprep.subr.mxu0 %v3076_v8 }
 0xa53   :  { %v1736_v43 = vpop.f32.mrb[30].mxu0 }
 0xa54   :  { %v1740_v46 = vmul.f32 0.001953125, %v1736_v43  ;;  %v2635_v48 = vpop.f32.mrb[31].mxu0 }
 0xa56   :  { %v1742_v4 = vadd.f32 1e-05, %v1740_v46 }
 0xa58   :  { %2992 = vrsqrt.f32 %v1742_v4 }
 0xa62   :  { %v2993_v51 = vpop.eup %2992 }
 0xa63   :  { %v1744_v52 = vmul.f32 %v2993_v51, %v1741_v49 }
 0xa65   :  { %2639 = vmatmul.mubr.msk.f32.vlgmr.msra.gmra.mrb[32].mxu0 %vm680_vm2, %v1744_v52 }
 0xa66   :  { %2642 = vmatpush3.msra.mxu0 %v3347_v27  ;;  %2643 = vmatprep.mubr.msk.f32.mxu0 %vm3075_vm1, %v3076_v8 }
 0xa69   :  { %2644 = vmatmul.mubr.msk.f32.vlgmr.msra.gmra.mrb[34].mxu0 %vm680_vm2, %v1818_v53 }
 0xb38   :  { %v1814_v55 = vpop.f32.mrb[32].mxu0 }
 0xb39   :  { %v1895_v56 = vrot.slane %v1814_v55, %v3372_v34  ;;  %v2640_v58 = vpop.f32.mrb[33].mxu0 }
 0xb3b   :  { %v1896_v59 = vmul.f32 %v1895_v56, %v1653_v54  ;;  %v1897_v41 = vmul.f32 %v1895_v56, %v1654_v57  ;;  %v1898_v9 = vmul.f32 %v1895_v56, %v1655_v29  ;;  %v1899_v61 = vmul.f32 %v1895_v56, %v1656_v31 }
 0xb3c   :  { %v1888_v38 = vpop.f32.mrb[34].mxu0 }
 0xb3d   :  { %v1903_v27 = vrot.slane %v1888_v38, %v3372_v34  ;;  %v2645_v6 = vpop.f32.mrb[35].mxu0  ;;  %v2996_v34 = vld [vmem:[%s3548_s0 + $0x10] sm:$0xff] }
 0xb3f   :  { %v1904_v62 = vadd.f32 %v1903_v27, %v1896_v59  ;;  %v1905_v8 = vadd.f32 %v1903_v27, %v1897_v41  ;;  %v1906_v39 = vadd.f32 %v1903_v27, %v1898_v9  ;;  %v1907_v15 = vadd.f32 %v1903_v27, %v1899_v61 }
 0xb41   :  { %v1908_v3 = vadd.f32 %v2994_v16, %v1904_v62  ;;  %v1909_v20 = vadd.f32 %v2995_v40, %v1905_v8  ;;  %v1910_v21 = vadd.f32 %v2996_v34, %v1906_v39  ;;  %v1911_v26 = vadd.f32 %v2997_v25, %v1907_v15 }
 0xb43   :  { %v1912_v30 = vmax.f32 %v1908_v3, 0.0  ;;  %v1913_v10 = vmax.f32 %v1909_v20, 0.0  ;;  %v1914_v11 = vmax.f32 %v1910_v21, 0.0  ;;  %v1915_v12 = vmax.f32 %v1911_v26, 0.0 }
 0xb45   :  { %1916 = vst [vmem:[#allocation7] sm:$0xff] %v1912_v30  ;;  %1917 = vst [vmem:[#allocation7 + $0x8] sm:$0xff] %v1913_v10 }
 0xb46   :  { %1918 = vst [vmem:[#allocation7 + $0x10] sm:$0xff] %v1914_v11  ;;  %1919 = vst [vmem:[#allocation7 + $0x18] sm:$0xff] %v1915_v12 }
 0xb47   :  { %3053 = shalt.err (!%p3050_p6)
}
 0xb48   :  { %s3054_s0 = scalar_lea.hbm %s3559_s11, 512 }
 0xb49   :  { %p3055_p7 = scmp.ne.s32.totalorder %s3559_s11, %s3054_s0  ;;  %p3058_p8 = scmp.lt.u32.totalorder %s3054_s0, %s3559_s11 }
 0xb4b   :  { %p3060_p9 = pnand %p3058_p8, %p3055_p7 }
 0xb4d   :  { %3063 = shalt.err (!%p3060_p9)
}
 0xb4e   :  { %1931 = dma.vmem_to_hbm [thread:$0]  %s1926_s10, 512, %s3559_s11, [#allocation4], %s3071_s27, %s3071_s27, %s3072_s28  }
 0xb4f   :  { %3068 = dma.done.wait [#allocation4], 512  }
 0xb50   :  { %3069 = vsyncadd [#allocation4], 4294966784 }
 0xb51   :  { %1935 = vsyncpa [#allocation3], 1 }
 0xb52   :  { %1936 = vsyncpa [#allocation6], 1 }
 0xb53   :  { %1937 = vsyncpa [#allocation4], 1 }

</bundles_post_ra>
